<compile_context>
chip_gen: v6e
topology: v6e:2x2x1
jax: 0.10.0
libtpu: 0.0.40
codegen_flags: <defaults>
</compile_context>

<pallas_src>
import jax
import jax.numpy as jnp
from jax.experimental import pallas as pl
from jax.experimental.pallas import tpu as pltpu

INPUT_SIZE = 28 * 28
HIDDEN1 = 128
HIDDEN2 = 64
HIDDEN3 = 32
OUTPUT_SIZE = 10
PADDED_OUT = 128       # lane-dense output width (multiple of 128, >= OUTPUT_SIZE)
NEG_BIG = -1e30        # bias of padded output columns -> softmax prob exactly 0


def fnn_kernel(x_ref,
               w1_ref, b1_ref,
               w2_ref, b2_ref,
               w3_ref, b3_ref,
               w4_ref, b4_ref,
               o_ref):
    # fc1 + ReLU.  bf16 x bf16 -> f32 accumulation on the MXU.
    # (.astype is a no-op when the producer already feeds bf16.)
    x = x_ref[...].astype(jnp.bfloat16)
    h = jnp.dot(x, w1_ref[...], preferred_element_type=jnp.float32) + b1_ref[...]
    h = jnp.maximum(h, 0.0)

    # fc2 + ReLU
    h = jnp.dot(h.astype(jnp.bfloat16), w2_ref[...],
                preferred_element_type=jnp.float32) + b2_ref[...]
    h = jnp.maximum(h, 0.0)

    # fc3 + ReLU
    h = jnp.dot(h.astype(jnp.bfloat16), w3_ref[...],
                preferred_element_type=jnp.float32) + b3_ref[...]
    h = jnp.maximum(h, 0.0)

    # fc4, padded to 128 lanes.  Padded columns carry a -1e30 f32 bias, so their
    # exp() underflows to exactly 0 and they contribute nothing to the softmax.
    logits = jnp.dot(h.astype(jnp.bfloat16), w4_ref[...],
                     preferred_element_type=jnp.float32) + b4_ref[...]

    # Numerically stable row softmax in f32; divide on the EUP via reciprocal.
    m = jnp.max(logits, axis=-1, keepdims=True)
    e = jnp.exp(logits - m)
    denom = jnp.sum(e, axis=-1, keepdims=True)
    o_ref[...] = (e * pl.reciprocal(denom, approx=True)).astype(o_ref.dtype)


def prepare_params(params):
    """One-time parameter prep (call ONCE, not per forward).

    Casts weights to bf16 and pads fc4 to a lane-dense 128-wide output (zero
    weight columns + -1e30 bias).  Biases stay f32, shaped (1, N).
    """
    (w1, b1, w2, b2, w3, b3, w4, b4) = params
    asrow = lambda b: jnp.asarray(b, jnp.float32).reshape(1, -1)
    w1b = w1.astype(jnp.bfloat16)
    w2b = w2.astype(jnp.bfloat16)
    w3b = w3.astype(jnp.bfloat16)
    w4p = jnp.pad(w4.astype(jnp.bfloat16),
                  ((0, 0), (0, PADDED_OUT - OUTPUT_SIZE)))
    b4p = jnp.pad(asrow(b4), ((0, 0), (0, PADDED_OUT - OUTPUT_SIZE)),
                  constant_values=NEG_BIG)
    return (w1b, asrow(b1), w2b, asrow(b2), w3b, asrow(b3), w4p, b4p)


def fnn_forward(x, prepped_params, *, block_batch=1024):
    """Forward pass.

    x: (B, 784), f32 or (preferably) bf16 produced at the source.
    prepped_params: output of prepare_params().
    Returns (B, 10) bf16 softmax probabilities.
    """
    (w1, b1, w2, b2, w3, b3, w4p, b4p) = prepped_params

    B = x.shape[0]
    round8 = lambda n: ((n + 7) // 8) * 8
    # Batch tile: big (default up to 1024 rows) for DMA efficiency, but never
    # bigger than half the (rounded) batch so the grid has >= 2 "parallel"
    # tiles and v7x's second TensorCore gets work.  Always a multiple of 8.
    tb = max(8, min(block_batch, round8(pl.cdiv(round8(B), 2))))
    b_pad = pl.cdiv(B, tb) * tb
    if b_pad != B:
        x = jnp.pad(x, ((0, b_pad - B), (0, 0)))

    # Rough double-buffered VMEM footprint; raise the scoped limit only when we
    # approach v5e's 16 MiB default (stay far under v7x's 64 MiB physical VMEM).
    x_item = jnp.dtype(x.dtype).itemsize
    vmem_est = (2 * tb * INPUT_SIZE * x_item                      # x tiles
                + 2 * tb * PADDED_OUT * 2                         # bf16 out tiles
                + 2 * 2 * (INPUT_SIZE * HIDDEN1 + HIDDEN1 * HIDDEN2
                           + HIDDEN2 * HIDDEN3 + HIDDEN3 * PADDED_OUT)  # bf16 weights
                + 2 * 4 * (HIDDEN1 + HIDDEN2 + HIDDEN3 + PADDED_OUT))   # f32 biases
    cp_kwargs = dict(dimension_semantics=("parallel",))
    if vmem_est > 12 * 1024 * 1024:
        cp_kwargs["vmem_limit_bytes"] = min(int(vmem_est * 3 // 2),
                                            48 * 1024 * 1024)

    const = lambda i: (0, 0)  # weights/biases: same block every step -> stay resident

    out = pl.pallas_call(
        fnn_kernel,
        out_shape=jax.ShapeDtypeStruct((b_pad, PADDED_OUT), jnp.bfloat16),
        grid_spec=pltpu.PrefetchScalarGridSpec(
            num_scalar_prefetch=0,
            grid=(b_pad // tb,),
            in_specs=[
                pl.BlockSpec((tb, INPUT_SIZE), lambda i: (i, 0)),   # x tile
                pl.BlockSpec((INPUT_SIZE, HIDDEN1), const),         # w1 (bf16)
                pl.BlockSpec((1, HIDDEN1), const),                  # b1 (f32)
                pl.BlockSpec((HIDDEN1, HIDDEN2), const),            # w2
                pl.BlockSpec((1, HIDDEN2), const),                  # b2
                pl.BlockSpec((HIDDEN2, HIDDEN3), const),            # w3
                pl.BlockSpec((1, HIDDEN3), const),                  # b3
                pl.BlockSpec((HIDDEN3, PADDED_OUT), const),         # w4 (padded)
                pl.BlockSpec((1, PADDED_OUT), const),               # b4 (padded)
            ],
            out_specs=pl.BlockSpec((tb, PADDED_OUT), lambda i: (i, 0)),
        ),
        compiler_params=pltpu.CompilerParams(**cp_kwargs),
    )(x, w1, b1, w2, b2, w3, b3, w4p, b4p)

    return out[:B, :OUTPUT_SIZE]


def fnn_reference(x, params):
    """Pure-JAX f32 reference matching the PyTorch module's forward."""
    (w1, b1, w2, b2, w3, b3, w4, b4) = params
    h = jax.nn.relu(x @ w1 + b1)
    h = jax.nn.relu(h @ w2 + b2)
    h = jax.nn.relu(h @ w3 + b3)
    return jax.nn.softmax(h @ w4 + b4, axis=-1)


def init_linear(key, fan_in, fan_out):
    # Matches nn.Linear's default init: U(-1/sqrt(fan_in), 1/sqrt(fan_in)).
    kw, kb = jax.random.split(key)
    bound = 1.0 / jnp.sqrt(jnp.float32(fan_in))
    w = jax.random.uniform(kw, (fan_in, fan_out), jnp.float32, -bound, bound)
    b = jax.random.uniform(kb, (1, fan_out), jnp.float32, -bound, bound)
    return w, b


if __name__ == "__main__":
    key = jax.random.PRNGKey(0)
    k_x, k1, k2, k3, k4 = jax.random.split(key, 5)

    B = 16
    # x is produced natively in bf16 at the source (no standalone wrapper cast),
    # halving the dominant streaming-input HBM traffic.
    x = jax.random.normal(k_x, (B, INPUT_SIZE), jnp.bfloat16)

    w1, b1 = init_linear(k1, INPUT_SIZE, HIDDEN1)
    w2, b2 = init_linear(k2, HIDDEN1, HIDDEN2)
    w3, b3 = init_linear(k3, HIDDEN2, HIDDEN3)
    w4, b4 = init_linear(k4, HIDDEN3, OUTPUT_SIZE)
    params = (w1, b1, w2, b2, w3, b3, w4, b4)

    # One-time parameter prep, hoisted out of the forward (per review).
    prepped = prepare_params(params)

    # Default block_batch; B=16 -> tb=8, a 2-step "parallel" grid.
    out = fnn_forward(x, prepped)
    out = jax.block_until_ready(out)

    # f32 reference on the same (bf16-quantized) inputs.
    ref = fnn_reference(x.astype(jnp.float32), params)
    out_f32 = out.astype(jnp.float32)

    # Sanity: shape, softmax rows sum to ~1, and match the f32 reference within
    # bf16-weight/-input/-output + approx-reciprocal tolerance.
    assert out.shape == (B, OUTPUT_SIZE)
    assert out.dtype == jnp.bfloat16
    row_sums = jnp.sum(out_f32, axis=1)
    assert bool(jnp.all(jnp.abs(row_sums - 1.0) < 2e-2))
    assert bool(jnp.all(jnp.abs(out_f32 - ref) < 5e-2))

    print("KERNEL_OK")
</pallas_src>

<mosaic_0001>
module attributes {stable_mosaic.version = 11 : i64} {
  func.func @fnn_kernel(%arg0: i32, %arg1: memref<8x784xbf16, #tpu.memory_space<vmem>>, %arg2: memref<784x128xbf16, #tpu.memory_space<vmem>>, %arg3: memref<1x128xf32, #tpu.memory_space<vmem>>, %arg4: memref<128x64xbf16, #tpu.memory_space<vmem>>, %arg5: memref<1x64xf32, #tpu.memory_space<vmem>>, %arg6: memref<64x32xbf16, #tpu.memory_space<vmem>>, %arg7: memref<1x32xf32, #tpu.memory_space<vmem>>, %arg8: memref<32x128xbf16, #tpu.memory_space<vmem>>, %arg9: memref<1x128xf32, #tpu.memory_space<vmem>>, %arg10: memref<8x128xbf16, #tpu.memory_space<vmem>>) attributes {dimension_semantics = [#tpu.dimension_semantics<parallel>], iteration_bounds = array<i64: 2>, scalar_prefetch = 0 : i64, scratch_operands = 0 : i64, tpu.core_type = #tpu.core_type<tc>, window_params = [{transform_indices = @transform_0, window_bounds = array<i64: 8, 784>}, {pipeline_mode = #tpu.pipeline_mode<synchronous>, transform_indices = @transform_1, window_bounds = array<i64: 784, 128>}, {pipeline_mode = #tpu.pipeline_mode<synchronous>, transform_indices = @transform_2, window_bounds = array<i64: 1, 128>}, {pipeline_mode = #tpu.pipeline_mode<synchronous>, transform_indices = @transform_3, window_bounds = array<i64: 128, 64>}, {pipeline_mode = #tpu.pipeline_mode<synchronous>, transform_indices = @transform_4, window_bounds = array<i64: 1, 64>}, {pipeline_mode = #tpu.pipeline_mode<synchronous>, transform_indices = @transform_5, window_bounds = array<i64: 64, 32>}, {pipeline_mode = #tpu.pipeline_mode<synchronous>, transform_indices = @transform_6, window_bounds = array<i64: 1, 32>}, {pipeline_mode = #tpu.pipeline_mode<synchronous>, transform_indices = @transform_7, window_bounds = array<i64: 32, 128>}, {pipeline_mode = #tpu.pipeline_mode<synchronous>, transform_indices = @transform_8, window_bounds = array<i64: 1, 128>}, {transform_indices = @transform_9, window_bounds = array<i64: 8, 128>}]} {
    %c0 = arith.constant 0 : index
    %c0_0 = arith.constant 0 : index
    %0 = vector.load %arg1[%c0, %c0_0] : memref<8x784xbf16, #tpu.memory_space<vmem>>, vector<8x784xbf16>
    %c0_1 = arith.constant 0 : index
    %c0_2 = arith.constant 0 : index
    %1 = vector.load %arg2[%c0_1, %c0_2] : memref<784x128xbf16, #tpu.memory_space<vmem>>, vector<784x128xbf16>
    %cst = arith.constant dense<0.000000e+00> : vector<8x128xf32>
    %2 = tpu.matmul %0, %1, %cst {dimension_numbers = #tpu.dot_dimension_numbers<[1], [0], [0], [1], [0, 0, 1, 1], [], []>} : vector<8x784xbf16>, vector<784x128xbf16>, vector<8x128xf32> -> vector<8x128xf32>
    %c0_3 = arith.constant 0 : index
    %c0_4 = arith.constant 0 : index
    %3 = vector.load %arg3[%c0_3, %c0_4] : memref<1x128xf32, #tpu.memory_space<vmem>>, vector<1x128xf32>
    %4 = vector.broadcast %3 : vector<1x128xf32> to vector<8x128xf32>
    %5 = arith.addf %2, %4 : vector<8x128xf32>
    %cst_5 = arith.constant 0.000000e+00 : f32
    %6 = vector.broadcast %cst_5 : f32 to vector<8x128xf32>
    %7 = arith.maximumf %5, %6 : vector<8x128xf32>
    %8 = arith.truncf %7 : vector<8x128xf32> to vector<8x128xbf16>
    %c0_6 = arith.constant 0 : index
    %c0_7 = arith.constant 0 : index
    %9 = vector.load %arg4[%c0_6, %c0_7] : memref<128x64xbf16, #tpu.memory_space<vmem>>, vector<128x64xbf16>
    %cst_8 = arith.constant dense<0.000000e+00> : vector<8x64xf32>
    %10 = tpu.matmul %8, %9, %cst_8 {dimension_numbers = #tpu.dot_dimension_numbers<[1], [0], [0], [1], [0, 0, 1, 1], [], []>} : vector<8x128xbf16>, vector<128x64xbf16>, vector<8x64xf32> -> vector<8x64xf32>
    %c0_9 = arith.constant 0 : index
    %c0_10 = arith.constant 0 : index
    %11 = vector.load %arg5[%c0_9, %c0_10] : memref<1x64xf32, #tpu.memory_space<vmem>>, vector<1x64xf32>
    %12 = vector.broadcast %11 : vector<1x64xf32> to vector<8x64xf32>
    %13 = arith.addf %10, %12 : vector<8x64xf32>
    %cst_11 = arith.constant 0.000000e+00 : f32
    %14 = vector.broadcast %cst_11 : f32 to vector<8x64xf32>
    %15 = arith.maximumf %13, %14 : vector<8x64xf32>
    %16 = arith.truncf %15 : vector<8x64xf32> to vector<8x64xbf16>
    %c0_12 = arith.constant 0 : index
    %c0_13 = arith.constant 0 : index
    %17 = vector.load %arg6[%c0_12, %c0_13] : memref<64x32xbf16, #tpu.memory_space<vmem>>, vector<64x32xbf16>
    %cst_14 = arith.constant dense<0.000000e+00> : vector<8x32xf32>
    %18 = tpu.matmul %16, %17, %cst_14 {dimension_numbers = #tpu.dot_dimension_numbers<[1], [0], [0], [1], [0, 0, 1, 1], [], []>} : vector<8x64xbf16>, vector<64x32xbf16>, vector<8x32xf32> -> vector<8x32xf32>
    %c0_15 = arith.constant 0 : index
    %c0_16 = arith.constant 0 : index
    %19 = vector.load %arg7[%c0_15, %c0_16] : memref<1x32xf32, #tpu.memory_space<vmem>>, vector<1x32xf32>
    %20 = vector.broadcast %19 : vector<1x32xf32> to vector<8x32xf32>
    %21 = arith.addf %18, %20 : vector<8x32xf32>
    %cst_17 = arith.constant 0.000000e+00 : f32
    %22 = vector.broadcast %cst_17 : f32 to vector<8x32xf32>
    %23 = arith.maximumf %21, %22 : vector<8x32xf32>
    %24 = arith.truncf %23 : vector<8x32xf32> to vector<8x32xbf16>
    %c0_18 = arith.constant 0 : index
    %c0_19 = arith.constant 0 : index
    %25 = vector.load %arg8[%c0_18, %c0_19] : memref<32x128xbf16, #tpu.memory_space<vmem>>, vector<32x128xbf16>
    %cst_20 = arith.constant dense<0.000000e+00> : vector<8x128xf32>
    %26 = tpu.matmul %24, %25, %cst_20 {dimension_numbers = #tpu.dot_dimension_numbers<[1], [0], [0], [1], [0, 0, 1, 1], [], []>} : vector<8x32xbf16>, vector<32x128xbf16>, vector<8x128xf32> -> vector<8x128xf32>
    %c0_21 = arith.constant 0 : index
    %c0_22 = arith.constant 0 : index
    %27 = vector.load %arg9[%c0_21, %c0_22] : memref<1x128xf32, #tpu.memory_space<vmem>>, vector<1x128xf32>
    %28 = vector.broadcast %27 : vector<1x128xf32> to vector<8x128xf32>
    %29 = arith.addf %26, %28 : vector<8x128xf32>
    %cst_23 = arith.constant dense<0xFF800000> : vector<8xf32>
    %30 = vector.multi_reduction <maximumf>, %29, %cst_23 [1] : vector<8x128xf32> to vector<8xf32>
    %31 = vector.shape_cast %30 : vector<8xf32> to vector<8x1xf32>
    %32 = vector.broadcast %31 : vector<8x1xf32> to vector<8x128xf32>
    %33 = arith.subf %29, %32 : vector<8x128xf32>
    %34 = math.exp %33 : vector<8x128xf32>
    %cst_24 = arith.constant dense<0.000000e+00> : vector<8xf32>
    %35 = vector.multi_reduction <add>, %34, %cst_24 [1] : vector<8x128xf32> to vector<8xf32>
    %36 = vector.shape_cast %35 : vector<8xf32> to vector<8x1xf32>
    %37 = tpu.reciprocal %36 {approx = true} : vector<8x1xf32> -> vector<8x1xf32>
    %38 = vector.broadcast %37 : vector<8x1xf32> to vector<8x128xf32>
    %39 = arith.mulf %34, %38 : vector<8x128xf32>
    %40 = arith.truncf %39 : vector<8x128xf32> to vector<8x128xbf16>
    %c0_25 = arith.constant 0 : index
    %c0_26 = arith.constant 0 : index
    %41 = vector.load %arg10[%c0_25, %c0_26] : memref<8x128xbf16, #tpu.memory_space<vmem>>, vector<8x128xbf16>
    tpu.vector_store %arg10[%c0_25, %c0_26], %40 {strides = array<i32>} : memref<8x128xbf16, #tpu.memory_space<vmem>>, vector<8x128xbf16>,
    return
  }
  func.func @transform_0(%arg0: i32) -> (i32, i32) {
    %c0_i32 = arith.constant 0 : i32
    %c0_i32_0 = arith.constant 0 : i32
    return %arg0, %c0_i32 : i32, i32
  }
  func.func @transform_1(%arg0: i32) -> (i32, i32) {
    %c0_i32 = arith.constant 0 : i32
    %c0_i32_0 = arith.constant 0 : i32
    %c0_i32_1 = arith.constant 0 : i32
    return %c0_i32, %c0_i32_0 : i32, i32
  }
  func.func @transform_2(%arg0: i32) -> (i32, i32) {
    %c0_i32 = arith.constant 0 : i32
    %c0_i32_0 = arith.constant 0 : i32
    %c0_i32_1 = arith.constant 0 : i32
    return %c0_i32, %c0_i32_0 : i32, i32
  }
  func.func @transform_3(%arg0: i32) -> (i32, i32) {
    %c0_i32 = arith.constant 0 : i32
    %c0_i32_0 = arith.constant 0 : i32
    %c0_i32_1 = arith.constant 0 : i32
    return %c0_i32, %c0_i32_0 : i32, i32
  }
  func.func @transform_4(%arg0: i32) -> (i32, i32) {
    %c0_i32 = arith.constant 0 : i32
    %c0_i32_0 = arith.constant 0 : i32
    %c0_i32_1 = arith.constant 0 : i32
    return %c0_i32, %c0_i32_0 : i32, i32
  }
  func.func @transform_5(%arg0: i32) -> (i32, i32) {
    %c0_i32 = arith.constant 0 : i32
    %c0_i32_0 = arith.constant 0 : i32
    %c0_i32_1 = arith.constant 0 : i32
    return %c0_i32, %c0_i32_0 : i32, i32
  }
  func.func @transform_6(%arg0: i32) -> (i32, i32) {
    %c0_i32 = arith.constant 0 : i32
    %c0_i32_0 = arith.constant 0 : i32
    %c0_i32_1 = arith.constant 0 : i32
    return %c0_i32, %c0_i32_0 : i32, i32
  }
  func.func @transform_7(%arg0: i32) -> (i32, i32) {
    %c0_i32 = arith.constant 0 : i32
    %c0_i32_0 = arith.constant 0 : i32
    %c0_i32_1 = arith.constant 0 : i32
    return %c0_i32, %c0_i32_0 : i32, i32
  }
  func.func @transform_8(%arg0: i32) -> (i32, i32) {
    %c0_i32 = arith.constant 0 : i32
    %c0_i32_0 = arith.constant 0 : i32
    %c0_i32_1 = arith.constant 0 : i32
    return %c0_i32, %c0_i32_0 : i32, i32
  }
  func.func @transform_9(%arg0: i32) -> (i32, i32) {
    %c0_i32 = arith.constant 0 : i32
    %c0_i32_0 = arith.constant 0 : i32
    return %arg0, %c0_i32 : i32, i32
  }
}

</mosaic_0001>

<bundles_post_ra>
// kernel: tpu_custom_call.1
= control target key start
LH: loop header
LB: loop body
LE: loop exit
PB: predicated region body
PF: predicated region fallthrough
CT: control target
= control target key end

     0   :  { %14 = vsyncpa [#allocation3], 0  ;;  %s1986_s0 = inlined_call_operand.vmem [shape: bf16[16,784], index: 0, kind: input, shape index: {}]   ;;  %s1987_s1 = inlined_call_operand.hbm [shape: bf16[784,128], index: 1, kind: input, shape index: {}]   ;;  %s1988_s2 = inlined_call_operand.vmem [shape: f32[1,128], index: 2, kind: input, shape index: {}]   ;;  %s1989_s3 = inlined_call_operand.vmem [shape: bf16[128,64], index: 3, kind: input, shape index: {}]   ;;  %s1990_s4 = inlined_call_operand.vmem [shape: f32[1,64], index: 4, kind: input, shape index: {}]   ;;  %s1991_s5 = inlined_call_operand.vmem [shape: bf16[64,32], index: 5, kind: input, shape index: {}]   ;;  %s1992_s6 = inlined_call_operand.vmem [shape: f32[1,32], index: 6, kind: input, shape index: {}]   ;;  %s1993_s7 = inlined_call_operand.vmem [shape: bf16[32,128], index: 7, kind: input, shape index: {}]   ;;  %s1994_s8 = inlined_call_operand.vmem [shape: f32[1,128], index: 8, kind: input, shape index: {}]   ;;  %s1995_s9 = inlined_call_operand.hbm [shape: bf16[16,128], index: 9, kind: output, shape index: {}]  }
   0x1   :  { %15 = vsyncpa [#allocation4], 0 }
   0x2   :  { %17 = vsyncpa [#allocation4 + $0x1], 0  ;;  %s1798_s30 = smov 0   ;;  %s1800_s10 = smov 0  }
   0x3   :  { %s1802_s11 = smov 0   ;;  %s1804_s12 = smov 0  }
   0x4 LB: > { %s1819_s13 = sadd.s32 4294967295, %s1740_s12   ;;  %s1301_s14 = sadd.s32 4294967294, %s1740_s12   ;;  %s1740_s12 = sphi %s1804_s12, %s2003_s12   ;;  %s1736_s11 = sphi %s1802_s11, %s2002_s11   ;;  %s1732_s10 = sphi %s1800_s10, %s2001_s10   ;;  %s1728_s30 = sphi %s1798_s30, %s2000_s30  }
   0x5   : > { %s1823_s15 = sadd.s32 1, %s1740_s12   ;;  %s224_s16 = sadd.s32 1, %s1736_s11 }
   0x6   : > { %s221_s17 = ssub.s32 %s1740_s12, %s1823_s15  ;;  %p234_p0 = scmp.ne.s32.totalorder %s1736_s11, %s1732_s10 }
   0x7   : > { %p222_p1 = scmp.eq.s32.totalorder %s221_s17, 0  ;;  %p235_p2 = scmp.eq.s32.totalorder %s1819_s13, 1 }
   0x8   : > { %p240_p3 = scmp.ne.s32.totalorder %s1732_s10, %s1728_s30  ;;  %p241_p4 = scmp.eq.s32.totalorder %s1301_s14, 1 }
   0x9   : > { %s1834_s18 = scalar_select %p222_p1, %s1736_s11, %s224_s16  }
   0xa   : > { %p1836_p5 = por %p235_p2, %p234_p0  ;;  %p1840_p6 = por %p241_p4, %p240_p3 }
   0xb   : > { %p1302_p7 = scmp.ge.s32.totalorder %s1740_s12, 1  ;;  %p248_p8 = scmp.lt.s32.totalorder %s1740_s12, 3 }
   0xc   : > { %s1997_s20 = scalar_select %p1840_p6, 1, 0 }
   0xd   : > { %p1536_p9 = scmp.eq.s32.totalorder %s1819_s13, 0  ;;  %p1847_p10 = pnand %p1302_p7, %p248_p8 }
   0xe   : > { %s1742_s22 = smov [#allocation2]  }
   0xf   : > { %s260_s23 = sshll.u32 %s1742_s22, 4  ;;  %p1528_p11 = pneg %p1847_p10  ;;  %s261_s23 = int_to_ptr.vmem [resolvable:$true] %s260_s23 }
  0x10   : > { %s1661_s24 = scalar_lea.vmem %s261_s23, 6272  ;;  %p1669_p3 = scmp.lt.s32.totalorder %s261_s23, %s261_s23 }
  0x11   : > { %p1529_p12 = pnand %p1536_p9, %p1528_p11  ;;  %p1662_p0 = scmp.ne.s32.totalorder %s261_s23, %s1661_s24 }
  0x12   : > { %p1670_p4 = scmp.lt.s32.totalorder %s1661_s24, %s1661_s24 }
  0x13   : > { %p1652_p13 = pneg %p1529_p12 }
  0x14   : > { %p1671_p6 = por %p1670_p4, %p1669_p3 }
  0x15   : > { %p1664_p1 = pnand %p1662_p0, %p1652_p13 }
  0x17   : > { %p1665_p2 = pneg %p1664_p1 }
  0x19   : > { %p1672_p7 = pnand %p1671_p6, %p1665_p2 }
  0x1b   : > { %1675 = shalt.err (!%p1672_p7)
}
  0x1c   : > { %s1743_s25 = smov 64   ;;  %s1744_s26 = smov 4  }
  0x1d   : > { %1531 = dma.hbm_to_vmem [thread:$0]  (!%p1529_p12), %s1987_s1, 6272, %s261_s23, [#allocation3], %s1743_s25, %s1743_s25, %s1744_s26  }
  0x1e   : > { %305 = sbr.rel (%p1847_p10) target bundleno = 1224 (0x4c8), region = 56 }
  0x23   : > { %1719 = dma.done.wait (%p1536_p9), [#allocation3], 6272  }
  0x24   : > { %1721 = vsyncadd (%p1536_p9), [#allocation3], 4294961024  ;;  %v1576_v0 = vld [vmem:[#allocation2 + $0x78] sm:$0xff]   ;;  %v1580_v4 = vld [vmem:[#allocation2 + $0x70] sm:$0xff]   ;;  %p341_p6 = scmp.lt.s32.totalorder %s1819_s13, 1  ;;  %v1745_v41 = vmov 0.0  }
  0x25   : > { %v1577_v1 = vld [vmem:[#allocation2 + $0x38] sm:$0xff]   ;;  %1390 = vmatprep.subr.bf16.mxu0 %v1576_v0  ;;  %v1581_v5 = vld [vmem:[#allocation2 + $0x30] sm:$0xff]   ;;  %v1584_v8 = vld [vmem:[#allocation2 + $0x68] sm:$0xff]   ;;  %vm1746_vm0 = vmmov 0   ;;  %vm774_vm1 = vcmask 130048   ;;  %vm1092_vm2 = vcmask 523264  }
  0x26   : > { %v1578_v2 = vld [vmem:[#allocation2 + $0xf8] sm:$0xff]   ;;  %1391 = vmatpush3.bf16.msra.mxu0 %v1577_v1  ;;  %v1582_v6 = vld [vmem:[#allocation2 + $0xf0] sm:$0xff]   ;;  %v1585_v9 = vld [vmem:[#allocation2 + $0x28] sm:$0xff]   ;;  %s342_s29 = scalar_select %p341_p6, %s1819_s13, 1  ;;  %vm1161_vm3 = vcmask 261120  }
  0x27   : > { %v1579_v3 = vld [vmem:[#allocation2 + $0xb8] sm:$0xff]   ;;  %1412 = vmatprep.subr.bf16.mxu1 %v1578_v2  ;;  %1392 = vmatprep.subr.bf16.mxu0 %v1580_v4  ;;  %v1583_v7 = vld [vmem:[#allocation2 + $0xb0] sm:$0xff]   ;;  %v1586_v10 = vld [vmem:[#allocation2 + $0xe8] sm:$0xff]   ;;  %s338_s22 = sand.u32 1, %s1732_s10   ;;  %s1387_s24 = sshll.u32 %s1819_s13, 6 }
  0x28   : > { %1413 = vmatpush3.bf16.msra.mxu1 %v1579_v3  ;;  %v1587_v11 = vld [vmem:[#allocation2 + $0xa8] sm:$0xff]   ;;  %v1588_v12 = vld [vmem:[#allocation2 + $0x60] sm:$0xff]   ;;  %v1592_v16 = vld [vmem:[#allocation2 + $0x58] sm:$0xff]   ;;  %s1521_s14 = smul.u32 28, %s342_s29  ;;  %s1307_s23 = sshll.u32 %s338_s22, 2 }
  0x29   : > { %1414 = vmatprep.subr.bf16.mxu1 %v1582_v6  ;;  %v1589_v13 = vld [vmem:[#allocation2 + $0x20] sm:$0xff]   ;;  %v1593_v17 = vld [vmem:[#allocation2 + $0x18] sm:$0xff]   ;;  %v1596_v20 = vld [vmem:[#allocation2 + $0x50] sm:$0xff]   ;;  %s340_s25 = scalar_lea.vmem [#allocation5], %s1307_s23  ;;  %s1228_s29 = scalar_lea.hbm %s1995_s9, %s1387_s24 }
  0x2a   : > { %1393 = vmatpush3.bf16.msra.mxu0 %v1581_v5  ;;  %v1590_v14 = vld [vmem:[#allocation2 + $0xe0] sm:$0xff]   ;;  %v1594_v18 = vld [vmem:[#allocation2 + $0xd8] sm:$0xff]   ;;  %v1597_v21 = vld [vmem:[#allocation2 + $0x10] sm:$0xff]   ;;  %s1869_s21 = scalar_lea.vmem %s1986_s0, %s1521_s14  ;;  %s1230_s26 = sshll.u32 %s340_s25, 4  ;;  %s1231_s26 = int_to_ptr.vmem [resolvable:$true] %s1230_s26 }
  0x2b   : > { %1394 = vmatprep.subr.bf16.mxu0 %v1584_v8  ;;  %v1591_v15 = vld [vmem:[#allocation2 + $0xa0] sm:$0xff]   ;;  %v1595_v19 = vld [vmem:[#allocation2 + $0x98] sm:$0xff]   ;;  %v1598_v22 = vld [vmem:[#allocation2 + $0xd0] sm:$0xff]   ;;  %s1217_s14 = scalar_lea.sflag [#allocation4], %s338_s22  ;;  %s1676_s16 = scalar_lea.vmem %s1231_s26, 64 }
  0x2c   : > { %1415 = vmatpush3.bf16.msra.mxu1 %v1583_v7  ;;  %v1599_v23 = vld [vmem:[#allocation2 + $0x90] sm:$0xff]   ;;  %v1600_v24 = vld [vmem:[#allocation2 + $0x48] sm:$0xff]   ;;  %v1604_v28 = vld [vmem:[#allocation2 + $0x40] sm:$0xff]   ;;  %p1677_p8 = scmp.ne.s32.totalorder %s1231_s26, %s1676_s16  ;;  %s1747_s17 = smov [#allocation5]  }
  0x2d   : > { %1416 = vmatprep.subr.bf16.mxu1 %v1586_v10  ;;  %v1601_v25 = vld [vmem:[#allocation2 + $0x8] sm:$0xff]   ;;  %v1605_v29 = vld [vmem:[#allocation2] sm:$0xff]   ;;  %v1611_v35 = vld [vmem:[#allocation2 + $0x178] sm:$0xff]  }
  0x2e   : > { %1395 = vmatpush3.bf16.msra.mxu0 %v1585_v9  ;;  %v1602_v26 = vld [vmem:[#allocation2 + $0xc8] sm:$0xff]   ;;  %v1606_v30 = vld [vmem:[#allocation2 + $0xc0] sm:$0xff]   ;;  %v1614_v39 = vld [vmem:[#allocation2 + $0x138] sm:$0xff]   ;;  %p1678_p9 = pnand %p1677_p8, %p1836_p5 }
  0x2f   : > { %1396 = vmatprep.subr.bf16.mxu0 %v1588_v12  ;;  %v1603_v27 = vld [vmem:[#allocation2 + $0x88] sm:$0xff]   ;;  %v347_v31 = vld [vmem:[%s1869_s21] sm:$0xff]  ;;  %v1615_v40 = vld [vmem:[#allocation2 + $0x170] sm:$0xff]  }
  0x30   : > { %1417 = vmatpush3.bf16.msra.mxu1 %v1587_v11  ;;  %v1310_v32 = vcombine.low %v347_v31, %v347_v31  ;;  %v1311_v33 = vcombine.high %v347_v31, %v347_v31  ;;  %v1610_v34 = vld [vmem:[#allocation2 + $0x80] sm:$0xff]   ;;  %v348_v36 = vld [vmem:[%s1869_s21 + $0x8] sm:$0xff]  ;;  %v1616_v42 = vld [vmem:[#allocation2 + $0x130] sm:$0xff]   ;;  %p1679_p10 = pneg %p1678_p9 }
  0x31   : > { %1418 = vmatprep.subr.bf16.mxu1 %v1590_v14  ;;  %v1312_v37 = vcombine.low %v348_v36, %v348_v36  ;;  %v1313_v38 = vcombine.high %v348_v36, %v348_v36  ;;  %v1617_v43 = vld [vmem:[#allocation2 + $0x168] sm:$0xff]   ;;  %v1619_v45 = vld [vmem:[#allocation2 + $0x160] sm:$0xff]   ;;  %v1621_v47 = vld [vmem:[#allocation2 + $0x158] sm:$0xff]  }
  0x32   : > { %1397 = vmatpush3.bf16.msra.mxu0 %v1589_v13  ;;  %810 = vmatprep.mubr.bf16.mxu0 %v1311_v33  ;;  %v1618_v44 = vld [vmem:[#allocation2 + $0x128] sm:$0xff]   ;;  %v1620_v46 = vld [vmem:[#allocation2 + $0x120] sm:$0xff]   ;;  %v1622_v48 = vld [vmem:[#allocation2 + $0x118] sm:$0xff]  }
  0x33   : > { %1398 = vmatprep.subr.bf16.mxu0 %v1592_v16  ;;  %850 = vmatprep.mubr.bf16.mxu1 %v1313_v38  ;;  %v1609_v49 = vld [vmem:[%s1869_s21 + $0x18] ss:$0 sps:$4 sm:$0xff]   ;;  %v1623_v50 = vld [vmem:[#allocation2 + $0x150] sm:$0xff]   ;;  %v1629_v51 = vld [vmem:[#allocation2 + $0x180] sm:$0xff]  }
  0x34   : > { %1419 = vmatpush3.bf16.msra.mxu1 %v1591_v15  ;;  %v349_v52 = vld [vmem:[%s1869_s21 + $0x10] sm:$0xff]  ;;  %v1625_v55 = vld [vmem:[#allocation2 + $0x148] sm:$0xff]   ;;  %v1627_v57 = vld [vmem:[#allocation2 + $0x140] sm:$0xff]   ;;  %s1680_s21 = sshll.u32 %s1747_s17, 4  ;;  %s1681_s21 = int_to_ptr.vmem [resolvable:$false] %s1680_s21 }
  0x35   : > { %1420 = vmatprep.subr.bf16.mxu1 %v1594_v18  ;;  %v1624_v53 = vld [vmem:[#allocation2 + $0x110] sm:$0xff]   ;;  %v1315_v54 = vcombine.high %v349_v52, %v349_v52  ;;  %v1626_v56 = vld [vmem:[#allocation2 + $0x108] sm:$0xff]   ;;  %v1628_v58 = vld [vmem:[#allocation2 + $0x100] sm:$0xff]   ;;  %v1314_v59 = vcombine.low %v349_v52, %v349_v52  ;;  %s1682_s13 = scalar_lea.vmem %s1681_s21, 128  ;;  %p1683_p11 = scmp.lt.s32.totalorder %s1231_s26, %s1681_s21 }
  0x36   : > { %1399 = vmatpush3.bf16.msra.mxu0 %v1593_v17  ;;  %v1632_v60 = vld [vmem:[%s1989_s3 + $0x38] sm:$0xff]   ;;  %v1633_v61 = vld [vmem:[%s1989_s3 + $0x30] sm:$0xff]   ;;  %v1634_v62 = vld [vmem:[%s1989_s3 + $0x28] sm:$0xff]   ;;  %p1684_p12 = scmp.lt.s32.totalorder %s1682_s13, %s1676_s16 }
  0x37   : > { %1400 = vmatprep.subr.bf16.mxu0 %v1596_v20  ;;  %v1635_v63 = vld [vmem:[%s1989_s3 + $0x20] sm:$0xff]   ;;  %v1636_v0 = vld [vmem:[%s1989_s3 + $0x18] sm:$0xff]   ;;  %v1637_v1 = vld [vmem:[%s1989_s3 + $0x10] sm:$0xff]  }
  0x38   : > { %1421 = vmatpush3.bf16.msra.mxu1 %v1595_v19  ;;  %v1638_v2 = vld [vmem:[%s1989_s3 + $0x8] sm:$0xff]   ;;  %v1639_v3 = vld [vmem:[%s1989_s3] sm:$0xff]   ;;  %v1640_v4 = vld [vmem:[%s1991_s5 + $0x18] sm:$0xff]   ;;  %p1685_p13 = por %p1684_p12, %p1683_p11 }
  0x39   : > { %1422 = vmatprep.subr.bf16.mxu1 %v1598_v22  ;;  %v1641_v5 = vld [vmem:[%s1991_s5 + $0x10] sm:$0xff]   ;;  %v1309_v19 = vld [vmem:[%s1988_s2] ss:$0 sm:$0xff] }
  0x3a   : > { %1401 = vmatpush3.bf16.msra.mxu0 %v1597_v21  ;;  %v1643_v33 = vld [vmem:[%s1991_s5] sm:$0xff]   ;;  %p1686_p0 = pnand %p1685_p13, %p1679_p10 }
  0x3b   : > { %1402 = vmatprep.subr.bf16.mxu0 %v1600_v24  ;;  %v1382_v52 = vld [vmem:[%s1994_s8] ss:$0 sm:$0xff] }
  0x3c   : > { %1423 = vmatpush3.bf16.msra.mxu1 %v1599_v23 }
  0x3d   : > { %1424 = vmatprep.subr.bf16.mxu1 %v1602_v26 }
  0x3e   : > { %1403 = vmatpush3.bf16.msra.mxu0 %v1601_v25 }
  0x3f   : > { %1404 = vmatprep.subr.bf16.mxu0 %v1604_v28 }
  0x40   : > { %1425 = vmatpush3.bf16.msra.mxu1 %v1603_v27 }
  0x41   : > { %1426 = vmatprep.subr.bf16.mxu1 %v1606_v30 }
  0x42   : > { %1405 = vmatpush3.bf16.msra.mxu0 %v1605_v29 }
  0x43   : > { %1434 = vmatprep.subr.bf16.mxu0 %v1611_v35  ;;  %v1367_v35 = vld [vmem:[%s1990_s4] ss:$0 sm:$0xff] }
  0x44   : > { %1427 = vmatpush3.bf16.msra.mxu1 %v1610_v34  ;;  %v1644_v34 = vld [vmem:[%s1993_s7 + $0x8] sm:$0xff]  }
  0x45   : > { %811 = vmatmul.mubr.bf16.vlgmr.msra.gmra.mxu0 %v1310_v32  ;;  %1475 = vmatprep.subr.bf16.mxu1 %v1745_v41  ;;  %v1642_v32 = vld [vmem:[%s1991_s5 + $0x8] sm:$0xff]  }
  0x46   : > { %1435 = vmatpush3.bf16.msra.mxu0 %v1614_v39  ;;  %890 = vmatprep.mubr.bf16.mxu0 %v1315_v54 }
  0x47   : > { %851 = vmatmul.mubr.bf16.vlgmr.msra.gmra.mxu1 %v1312_v37  ;;  %1436 = vmatprep.subr.bf16.mxu0 %v1615_v40 }
  0x48   : > { %1477 = vmatprep.mubr.msk.bf16.mxu1 %vm1746_vm0, %v1745_v41  ;;  %1476 = vmatpush3.bf16.msra.mxu1 %v1629_v51 }
  0x49   : > { %1481 = vmatprep.subr.bf16.mxu1 %v1745_v41 }
  0x4a   : > { %1437 = vmatpush3.bf16.msra.mxu0 %v1616_v42 }
  0x4b   : > { %1438 = vmatprep.subr.bf16.mxu0 %v1617_v43 }
  0x4e   : > { %1439 = vmatpush3.bf16.msra.mxu0 %v1618_v44  ;;  %v1645_v44 = vld [vmem:[%s1993_s7] sm:$0xff]  }
  0x4f   : > { %1440 = vmatprep.subr.bf16.mxu0 %v1619_v45  ;;  %1478 = vmatmul.mubr.msk.bf16.vlgmr.msra.gmra.mxu1 %vm774_vm1, %v1609_v49 }
  0x50   : > { %1497 = vmatprep.mubr.msk.bf16.mxu1 %vm1746_vm0, %v1745_v41  ;;  %1482 = vmatpush3.bf16.msra.mxu1 %v1632_v60 }
  0x51   : > { %1483 = vmatprep.subr.bf16.mxu1 %v1745_v41 }
  0x52   : > { %1441 = vmatpush3.bf16.msra.mxu0 %v1620_v46 }
  0x53   : > { %1442 = vmatprep.subr.bf16.mxu0 %v1621_v47 }
  0x54   : > { %1484 = vmatpush3.bf16.msra.mxu1 %v1633_v61 }
  0x55   : > { %1485 = vmatprep.subr.bf16.mxu1 %v1745_v41 }
  0x56   : > { %1443 = vmatpush3.bf16.msra.mxu0 %v1622_v48 }
  0x57   : > { %1444 = vmatprep.subr.bf16.mxu0 %v1623_v50 }
  0x58   : > { %1486 = vmatpush3.bf16.msra.mxu1 %v1634_v62 }
  0x59   : > { %1487 = vmatprep.subr.bf16.mxu1 %v1745_v41 }
  0x5a   : > { %1445 = vmatpush3.bf16.msra.mxu0 %v1624_v53 }
  0x5b   : > { %1446 = vmatprep.subr.bf16.mxu0 %v1625_v55 }
  0x5c   : > { %1488 = vmatpush3.bf16.msra.mxu1 %v1635_v63 }
  0x5d   : > { %1489 = vmatprep.subr.bf16.mxu1 %v1745_v41 }
  0x5e   : > { %1447 = vmatpush3.bf16.msra.mxu0 %v1626_v56 }
  0x5f   : > { %1448 = vmatprep.subr.bf16.mxu0 %v1627_v57 }
  0x60   : > { %1490 = vmatpush3.bf16.msra.mxu1 %v1636_v0 }
  0x61   : > { %1491 = vmatprep.subr.bf16.mxu1 %v1745_v41 }
  0x62   : > { %1449 = vmatpush3.bf16.msra.mxu0 %v1628_v58 }
  0x63   : > { %1501 = vmatprep.subr.bf16.mxu0 %v1745_v41 }
  0x64   : > { %1492 = vmatpush3.bf16.msra.mxu1 %v1637_v1 }
  0x65   : > { %891 = vmatmul.mubr.bf16.vlgmr.msra.gmra.mxu0 %v1314_v59  ;;  %1493 = vmatprep.subr.bf16.mxu1 %v1745_v41 }
  0x66   : > { %1509 = vmatprep.mubr.msk.bf16.mxu0 %vm1746_vm0, %v1745_v41  ;;  %1502 = vmatpush3.bf16.msra.mxu0 %v1640_v4 }
  0x67   : > { %1503 = vmatprep.subr.bf16.mxu0 %v1745_v41 }
  0x68   : > { %1494 = vmatpush3.bf16.msra.mxu1 %v1638_v2 }
  0x69   : > { %1495 = vmatprep.subr.bf16.mxu1 %v1745_v41 }
  0x6a   : > { %1504 = vmatpush3.bf16.msra.mxu0 %v1641_v5 }
  0x6b   : > { %1505 = vmatprep.subr.bf16.mxu0 %v1745_v41 }
  0x6c   : > { %1496 = vmatpush3.bf16.msra.mxu1 %v1639_v3 }
  0x6d   : > { %1513 = vmatprep.subr.bf16.mxu1 %v1745_v41 }
  0x6e   : > { %1506 = vmatpush3.bf16.msra.mxu0 %v1642_v32 }
  0x6f   : > { %1507 = vmatprep.subr.bf16.mxu0 %v1745_v41 }
  0x72   : > { %1508 = vmatpush3.bf16.msra.mxu0 %v1643_v33 }
 0x105   : > { %v1406_v6 = vpop.f32.mrf.mxu0 }
 0x107   : > { %v1407_v7 = vpop.f32.mrf.mxu0  ;;  %v1428_v8 = vpop.f32.mrf.mxu1 }
 0x108   : > { %v1408_v18 = vadd.f32 %v1407_v7, %v1406_v6 }
 0x109   : > { %v1409_v9 = vpop.f32.mrf.mxu0  ;;  %v1429_v10 = vpop.f32.mrf.mxu1 }
 0x10a   : > { %v813_v20 = vadd.f32 %v1408_v18, %v1309_v19  ;;  %v1430_v21 = vadd.f32 %v1429_v10, %v1428_v8 }
 0x10b   : > { %v1410_v11 = vpop.f32.mrf.mxu0  ;;  %v1431_v12 = vpop.f32.mrf.mxu1 }
 0x10c   : > { %v853_v24 = vadd.f32 %v1430_v21, %v813_v20 }
 0x10d   : > { %v1432_v13 = vpop.f32.mrf.mxu1 }
 0x10f   : > { %v932_v14 = vpop.f32.mrf.mxu1 }
 0x111   : > { %v1479_v15 = vpop.f32.mrf.mxu1 }
 0x113   : > { %v935_v16 = vpop.f32.mrf.mxu1 }
 0x115   : > { %v1480_v17 = vpop.f32.mrf.mxu1 }
 0x125   : > { %v1450_v22 = vpop.f32.mrf.mxu0 }
 0x127   : > { %v1451_v23 = vpop.f32.mrf.mxu0 }
 0x128   : > { %v1452_v25 = vadd.f32 %v1451_v23, %v1450_v22 }
 0x129   : > { %v1453_v26 = vpop.f32.mrf.mxu0 }
 0x12a   : > { %v893_v27 = vadd.f32 %v1452_v25, %v853_v24 }
 0x12b   : > { %v1454_v28 = vpop.f32.mrf.mxu0 }
 0x12c   : > { %v933_v29 = vadd.f32 %v932_v14, %v893_v27 }
 0x12e   : > { %v938_v30 = vmax.f32 %v933_v29, 0.0 }
 0x130   : > { %v939_v31 = vpack.c.bf16 %v938_v30, %v938_v30 }
 0x132   : > { %1498 = vmatmul.mubr.bf16.vlgmr.msra.gmra.mxu1 %v939_v31 }
 0x133   : > { %1517 = vmatprep.mubr.msk.bf16.mxu1 %vm1746_vm0, %v1745_v41  ;;  %1514 = vmatpush3.bf16.msra.mxu1 %v1644_v34 }
 0x134   : > { %1515 = vmatprep.subr.bf16.mxu1 %v1745_v41  ;;  %v1376_v41 = vld [vmem:[%s1992_s6] ss:$0 sm:$0xff] }
 0x137   : > { %1516 = vmatpush3.bf16.msra.mxu1 %v1645_v44 }
 0x1f2   : > { %v1045_v36 = vpop.f32.mrf.mxu1 }
 0x1f3   : > { %v1046_v37 = vadd.f32 %v1367_v35, %v1045_v36 }
 0x1f4   : > { %v1499_v38 = vpop.f32.mrf.mxu1 }
 0x1f5   : > { %v1051_v39 = vmax.f32 %v1046_v37, 0.0 }
 0x1f6   : > { %v1048_v40 = vpop.f32.mrf.mxu1 }
 0x1f7   : > { %v1052_v42 = vpack.c.bf16 %v1051_v39, %v1051_v39 }
 0x1f8   : > { %v1500_v43 = vpop.f32.mrf.mxu1 }
 0x1f9   : > { %1510 = vmatmul.mubr.msk.bf16.vlgmr.msra.gmra.mxu0 %vm1092_vm2, %v1052_v42 }
 0x2b9   : > { %v1130_v45 = vpop.f32.mrf.mxu0 }
 0x2ba   : > { %v1131_v46 = vadd.f32 %v1376_v41, %v1130_v45 }
 0x2bb   : > { %v1511_v47 = vpop.f32.mrf.mxu0 }
 0x2bc   : > { %v1136_v48 = vmax.f32 %v1131_v46, 0.0 }
 0x2bd   : > { %v1133_v49 = vpop.f32.mrf.mxu0 }
 0x2be   : > { %v1137_v50 = vpack.c.bf16 %v1136_v48, %v1136_v48 }
 0x2bf   : > { %v1512_v51 = vpop.f32.mrf.mxu0 }
 0x2c0   : > { %1518 = vmatmul.mubr.msk.bf16.vlgmr.msra.gmra.mxu1 %vm1161_vm3, %v1137_v50 }
 0x380   : > { %v1199_v53 = vpop.f32.mrf.mxu1 }
 0x381   : > { %v1200_v54 = vadd.f32 %v1382_v52, %v1199_v53 }
 0x382   : > { %v1519_v55 = vpop.f32.mrf.mxu1 }
 0x383   : > { %1205 = vmax.xlane.f32.xlu0 %v1200_v54 }
 0x384   : > { %v1202_v56 = vpop.f32.mrf.mxu1 }
 0x386   : > { %v1520_v57 = vpop.f32.mrf.mxu1 }
 0x40c   : > { %v1206_v58 = vpop.xlane.xlu0 %1205 }
 0x40d   : > { %v1207_v59 = vsub.f32 %v1200_v54, %v1206_v58 }
 0x40f   : > { %v1208_v60 = vmul.f32 1.442695, %v1207_v59 }
 0x411   : > { %1646 = vpow2.f32 %v1208_v60 }
 0x41e   : > { %v1647_v61 = vpop.eup %1646 }
 0x41f   : > { %1210 = vadd.xlane.f32.xlu0 %v1647_v61 }
 0x4a8   : > { %v1211_v62 = vpop.xlane.xlu0 %1210 }
 0x4a9   : > { %1648 = vrcp.f32 %v1211_v62 }
 0x4b6   : > { %v1649_v63 = vpop.eup %1648 }
 0x4b7   : > { %v1213_v0 = vmul.f32 %v1649_v63, %v1647_v61 }
 0x4b9   : > { %v1214_v1 = vpack.c.bf16 %v1213_v0, %v1213_v0 }
 0x4bb   : > { %1215 = vst [vmem:[%s340_s25] sm:$0xf] %v1214_v1 }
 0x4bc   : > { %1689 = shalt.err (!%p1686_p0)
}
 0x4bd   : > { %s1690_s23 = scalar_lea.hbm %s1228_s29, 64  ;;  %s1694_s25 = scalar_lea.hbm %s1995_s9, 128 }
 0x4be   : > { %p1691_p1 = scmp.ne.s32.totalorder %s1228_s29, %s1690_s23  ;;  %p1695_p4 = scmp.lt.s32.totalorder %s1228_s29, %s1995_s9 }
 0x4bf   : > { %p1696_p7 = scmp.lt.s32.totalorder %s1694_s25, %s1690_s23 }
 0x4c0   : > { %p1692_p2 = pnand %p1691_p1, %p1836_p5 }
 0x4c1   : > { %p1697_p6 = por %p1696_p7, %p1695_p4 }
 0x4c2   : > { %p1693_p3 = pneg %p1692_p2 }
 0x4c4   : > { %p1698_p8 = pnand %p1697_p6, %p1693_p3 }
 0x4c6   : > { %1701 = shalt.err (!%p1698_p8)
}
 0x4c7   : > { %1526 = dma.vmem_to_hbm [thread:$0]  (%p1836_p5), %s1231_s26, 64, %s1228_s29, %s1217_s14  }
 0x4c8 PF: > { %p1538_p9 = scmp.ge.s32.totalorder %s1740_s12, 2  ;;  %s1242_s16 = sand.u32 1, %s1728_s30  }
 0x4c9   : > { %p1999_p10 = scmp.ne.s32.totalorder %s1997_s20, 0  ;;  %s1243_s17 = scalar_lea.sflag [#allocation4], %s1242_s16 }
 0x4cb   : > { %p1533_p11 = pnand %p1538_p9, %p1999_p10 }
 0x4cd   : > { %p1534_p12 = pneg %p1533_p11 }
 0x4cf   : > { %1723 = dma.done.wait (%p1534_p12), %s1243_s17, 64  }
 0x4d0   : > { %1725 = vsyncadd (%p1534_p12), %s1243_s17, 4294967232  ;;  %p20_p13 = scmp.ge.s32.totalorder %s1823_s15, 4   ;;  %s2000_s30 = smov %s1732_s10 }
 0x4d1   : > { %s2001_s10 = smov %s1736_s11  ;;  %s2002_s11 = smov %s1834_s18 }
 0x4d2   : > { %s2003_s12 = smov %s1823_s15  ;;  %22 = sbr.rel (!%p20_p13) target bundleno = 4 (0x4), region = 96 }
 0x4d7   :  { %1248 = vsyncpa [#allocation3], 1 }
 0x4d8   :  { %1250 = vsyncpa [#allocation3 + $0x1], 1 }
 0x4d9   :  { %1251 = vsyncpa [#allocation4], 1 }
 0x4da   :  { %1253 = vsyncpa [#allocation4 + $0x1], 1 }

</bundles_post_ra>
